<compile_context>
chip_gen: v7x
topology: tpu7x:2x2x1
jax: 0.10.0
libtpu: 0.0.40
codegen_flags: <defaults>
</compile_context>

<pallas_src>
import functools

import jax
import jax.numpy as jnp
from jax.experimental import pallas as pl
from jax.experimental.pallas import tpu as pltpu

HID_SIZE = 128
_LANE = 128
_SUBLANE = 8


def _round_up(x, m):
    return ((x + m - 1) // m) * m


def _actor_mlp_kernel(x_ref, w1_ref, b1_ref, w2_ref, b2_ref, w3_ref, b3_ref, o_ref):
    # Fused 3-layer tanh MLP on one (TB, K_pad) batch tile.
    # Matmuls run in the weights' dtype (f32 or bf16) with f32 accumulation;
    # bias adds and tanh stay in f32 (v5e has no bf16 VPU/EUP path).
    cd = w1_ref.dtype
    h1 = jnp.tanh(
        jnp.dot(x_ref[...], w1_ref[...], preferred_element_type=jnp.float32)
        + b1_ref[...]
    )
    h2 = jnp.tanh(
        jnp.dot(h1.astype(cd), w2_ref[...], preferred_element_type=jnp.float32)
        + b2_ref[...]
    )
    out = jnp.tanh(
        jnp.dot(h2.astype(cd), w3_ref[...], preferred_element_type=jnp.float32)
        + b3_ref[...]
    )
    o_ref[...] = out.astype(o_ref.dtype)


@functools.partial(jax.jit, static_argnames=("block_b", "matmul_dtype"))
def model_actor_forward(x, params, *, block_b=256, matmul_dtype=jnp.float32):
    """Fused 3-layer tanh MLP forward (batch-tiled, lane-dense, pipelined).

    x:      (B, obs_size) float32
    params: dict with w1 (obs,HID), b1 (1,HID), w2 (HID,HID), b2 (1,HID),
            w3 (HID,act), b3 (1,act)   [weights stored as (in, out)]
    returns (B, act_size) float32
    """
    w1, b1 = params["w1"], params["b1"]
    w2, b2 = params["w2"], params["b2"]
    w3, b3 = params["w3"], params["b3"]

    B, obs = x.shape
    act = w3.shape[1]

    # Lane/sublane-friendly padded problem: K -> 128, N -> 128, B -> multiple of TB.
    k_pad = _round_up(obs, _LANE)
    n_pad = _round_up(act, _LANE)
    block_b = _round_up(block_b, _SUBLANE)
    tb = min(block_b, _round_up(B, _SUBLANE))
    b_pad = _round_up(B, tb)
    num_tiles = b_pad // tb

    mm_dtype = jnp.dtype(matmul_dtype)
    f32 = jnp.float32

    # Host-side zero padding (cheap at these sizes; padded rows/cols contribute
    # nothing to the real outputs and are sliced away below).
    x_p = jnp.zeros((b_pad, k_pad), mm_dtype).at[:B, :obs].set(x.astype(mm_dtype))
    w1_p = jnp.zeros((k_pad, HID_SIZE), mm_dtype).at[:obs, :].set(w1.astype(mm_dtype))
    w2_p = w2.astype(mm_dtype)
    w3_p = jnp.zeros((HID_SIZE, n_pad), mm_dtype).at[:, :act].set(w3.astype(mm_dtype))
    b1_p = b1.astype(f32)
    b2_p = b2.astype(f32)
    b3_p = jnp.zeros((1, n_pad), f32).at[:, :act].set(b3.astype(f32))

    # VMEM budget (double-buffered x/out tiles + resident weights) with headroom.
    mm_sz = mm_dtype.itemsize
    weight_bytes = (k_pad * HID_SIZE + HID_SIZE * HID_SIZE + HID_SIZE * n_pad) * mm_sz
    bias_bytes = (2 * HID_SIZE + n_pad) * 4
    x_buf_bytes = 2 * tb * k_pad * mm_sz
    out_buf_bytes = 2 * tb * n_pad * 4
    interm_bytes = 4 * tb * HID_SIZE * 4  # h1/h2 live values
    budget = weight_bytes + bias_bytes + x_buf_bytes + out_buf_bytes + interm_bytes
    vmem_limit = int(min(32 * 1024 * 1024, max(8 * 1024 * 1024, 2 * budget)))

    cost = pl.CostEstimate(
        flops=2 * b_pad * (k_pad * HID_SIZE + HID_SIZE * HID_SIZE + HID_SIZE * n_pad),
        transcendentals=b_pad * (2 * HID_SIZE + n_pad),
        bytes_accessed=(b_pad * k_pad * mm_sz + b_pad * n_pad * 4
                        + weight_bytes + bias_bytes),
    )

    out_padded = pl.pallas_call(
        _actor_mlp_kernel,
        out_shape=jax.ShapeDtypeStruct((b_pad, n_pad), f32),
        grid=(num_tiles,),
        in_specs=[
            pl.BlockSpec((tb, k_pad), lambda i: (i, 0)),           # x tile (streamed)
            pl.BlockSpec((k_pad, HID_SIZE), lambda i: (0, 0)),     # w1 (VMEM-resident)
            pl.BlockSpec((1, HID_SIZE), lambda i: (0, 0)),         # b1
            pl.BlockSpec((HID_SIZE, HID_SIZE), lambda i: (0, 0)),  # w2
            pl.BlockSpec((1, HID_SIZE), lambda i: (0, 0)),         # b2
            pl.BlockSpec((HID_SIZE, n_pad), lambda i: (0, 0)),     # w3 (padded N)
            pl.BlockSpec((1, n_pad), lambda i: (0, 0)),            # b3 (padded N)
        ],
        out_specs=pl.BlockSpec((tb, n_pad), lambda i: (i, 0)),     # lane-dense store
        compiler_params=pltpu.CompilerParams(
            dimension_semantics=("parallel",),   # megacore sharding on v7x
            vmem_limit_bytes=vmem_limit,
        ),
        cost_estimate=cost,
    )(x_p, w1_p, b1_p, w2_p, b2_p, w3_p, b3_p)

    return out_padded[:B, :act]


def init_params(key, obs_size, act_size):
    """Deterministic init mimicking PyTorch nn.Linear default:
    U(-1/sqrt(fan_in), 1/sqrt(fan_in)) for both weights and biases.
    Weights are stored as (in_features, out_features)."""
    def linear(key, fan_in, fan_out):
        kw, kb = jax.random.split(key)
        bound = 1.0 / jnp.sqrt(fan_in)
        w = jax.random.uniform(kw, (fan_in, fan_out), jnp.float32, -bound, bound)
        b = jax.random.uniform(kb, (1, fan_out), jnp.float32, -bound, bound)
        return w, b

    k1, k2, k3 = jax.random.split(key, 3)
    w1, b1 = linear(k1, obs_size, HID_SIZE)
    w2, b2 = linear(k2, HID_SIZE, HID_SIZE)
    w3, b3 = linear(k3, HID_SIZE, act_size)
    # logstd parameter exists in the module but is unused in forward();
    # kept here only for parity with ModelActor.__init__.
    logstd = jnp.zeros((act_size,), jnp.float32)
    return {
        "w1": w1, "b1": b1,
        "w2": w2, "b2": b2,
        "w3": w3, "b3": b3,
        "logstd": logstd,
    }


def reference_forward(x, p):
    h1 = jnp.tanh(x @ p["w1"] + p["b1"])
    h2 = jnp.tanh(h1 @ p["w2"] + p["b2"])
    return jnp.tanh(h2 @ p["w3"] + p["b3"])


if __name__ == "__main__":
    # BipedalWalker-v3: obs_size=24, act_size=4. Batch chosen so it does NOT
    # divide the tile (exercises multi-tile grid, pipelining and batch padding).
    obs_size, act_size = 24, 4

    key = jax.random.PRNGKey(0)
    kp, kx = jax.random.split(key)
    params = init_params(kp, obs_size, act_size)

    x = jax.random.normal(kx, (200, obs_size), jnp.float32)
    out = jax.block_until_ready(
        model_actor_forward(x, params, block_b=128, matmul_dtype=jnp.float32)
    )
    ref = reference_forward(x, params)
    assert out.shape == (200, act_size)
    assert jnp.allclose(out, ref, atol=1e-5, rtol=1e-5), \
        "Pallas actor MLP mismatch vs JAX reference"
    # bf16 MXU fast path is available via matmul_dtype=jnp.bfloat16 (same kernel).

    print("KERNEL_OK")
</pallas_src>

<mosaic_0001>
module attributes {stable_mosaic.version = 11 : i64} {
  func.func @_actor_mlp_kernel(%arg0: i32, %arg1: memref<128x128xf32, #tpu.memory_space<vmem>>, %arg2: memref<128x128xf32, #tpu.memory_space<vmem>>, %arg3: memref<1x128xf32, #tpu.memory_space<vmem>>, %arg4: memref<128x128xf32, #tpu.memory_space<vmem>>, %arg5: memref<1x128xf32, #tpu.memory_space<vmem>>, %arg6: memref<128x128xf32, #tpu.memory_space<vmem>>, %arg7: memref<1x128xf32, #tpu.memory_space<vmem>>, %arg8: memref<128x128xf32, #tpu.memory_space<vmem>>) attributes {dimension_semantics = [#tpu.dimension_semantics<parallel>], iteration_bounds = array<i64: 2>, scalar_prefetch = 0 : i64, scratch_operands = 0 : i64, tpu.core_type = #tpu.core_type<tc>, window_params = [{transform_indices = @transform_0, window_bounds = array<i64: 128, 128>}, {pipeline_mode = #tpu.pipeline_mode<synchronous>, transform_indices = @transform_1, window_bounds = array<i64: 128, 128>}, {pipeline_mode = #tpu.pipeline_mode<synchronous>, transform_indices = @transform_2, window_bounds = array<i64: 1, 128>}, {pipeline_mode = #tpu.pipeline_mode<synchronous>, transform_indices = @transform_3, window_bounds = array<i64: 128, 128>}, {pipeline_mode = #tpu.pipeline_mode<synchronous>, transform_indices = @transform_4, window_bounds = array<i64: 1, 128>}, {pipeline_mode = #tpu.pipeline_mode<synchronous>, transform_indices = @transform_5, window_bounds = array<i64: 128, 128>}, {pipeline_mode = #tpu.pipeline_mode<synchronous>, transform_indices = @transform_6, window_bounds = array<i64: 1, 128>}, {transform_indices = @transform_7, window_bounds = array<i64: 128, 128>}]} {
    %c0 = arith.constant 0 : index
    %c0_0 = arith.constant 0 : index
    %0 = vector.load %arg1[%c0, %c0_0] : memref<128x128xf32, #tpu.memory_space<vmem>>, vector<128x128xf32>
    %c0_1 = arith.constant 0 : index
    %c0_2 = arith.constant 0 : index
    %1 = vector.load %arg2[%c0_1, %c0_2] : memref<128x128xf32, #tpu.memory_space<vmem>>, vector<128x128xf32>
    %cst = arith.constant dense<0.000000e+00> : vector<128x128xf32>
    %2 = tpu.matmul %0, %1, %cst {dimension_numbers = #tpu.dot_dimension_numbers<[1], [0], [0], [1], [0, 0, 1, 1], [], []>} : vector<128x128xf32>, vector<128x128xf32>, vector<128x128xf32> -> vector<128x128xf32>
    %c0_3 = arith.constant 0 : index
    %c0_4 = arith.constant 0 : index
    %3 = vector.load %arg3[%c0_3, %c0_4] : memref<1x128xf32, #tpu.memory_space<vmem>>, vector<1x128xf32>
    %4 = vector.broadcast %3 : vector<1x128xf32> to vector<128x128xf32>
    %5 = arith.addf %2, %4 : vector<128x128xf32>
    %6 = math.tanh %5 : vector<128x128xf32>
    %c0_5 = arith.constant 0 : index
    %c0_6 = arith.constant 0 : index
    %7 = vector.load %arg4[%c0_5, %c0_6] : memref<128x128xf32, #tpu.memory_space<vmem>>, vector<128x128xf32>
    %cst_7 = arith.constant dense<0.000000e+00> : vector<128x128xf32>
    %8 = tpu.matmul %6, %7, %cst_7 {dimension_numbers = #tpu.dot_dimension_numbers<[1], [0], [0], [1], [0, 0, 1, 1], [], []>} : vector<128x128xf32>, vector<128x128xf32>, vector<128x128xf32> -> vector<128x128xf32>
    %c0_8 = arith.constant 0 : index
    %c0_9 = arith.constant 0 : index
    %9 = vector.load %arg5[%c0_8, %c0_9] : memref<1x128xf32, #tpu.memory_space<vmem>>, vector<1x128xf32>
    %10 = vector.broadcast %9 : vector<1x128xf32> to vector<128x128xf32>
    %11 = arith.addf %8, %10 : vector<128x128xf32>
    %12 = math.tanh %11 : vector<128x128xf32>
    %c0_10 = arith.constant 0 : index
    %c0_11 = arith.constant 0 : index
    %13 = vector.load %arg6[%c0_10, %c0_11] : memref<128x128xf32, #tpu.memory_space<vmem>>, vector<128x128xf32>
    %cst_12 = arith.constant dense<0.000000e+00> : vector<128x128xf32>
    %14 = tpu.matmul %12, %13, %cst_12 {dimension_numbers = #tpu.dot_dimension_numbers<[1], [0], [0], [1], [0, 0, 1, 1], [], []>} : vector<128x128xf32>, vector<128x128xf32>, vector<128x128xf32> -> vector<128x128xf32>
    %c0_13 = arith.constant 0 : index
    %c0_14 = arith.constant 0 : index
    %15 = vector.load %arg7[%c0_13, %c0_14] : memref<1x128xf32, #tpu.memory_space<vmem>>, vector<1x128xf32>
    %16 = vector.broadcast %15 : vector<1x128xf32> to vector<128x128xf32>
    %17 = arith.addf %14, %16 : vector<128x128xf32>
    %18 = math.tanh %17 : vector<128x128xf32>
    %c0_15 = arith.constant 0 : index
    %c0_16 = arith.constant 0 : index
    %19 = vector.load %arg8[%c0_15, %c0_16] : memref<128x128xf32, #tpu.memory_space<vmem>>, vector<128x128xf32>
    tpu.vector_store %arg8[%c0_15, %c0_16], %18 {strides = array<i32>} : memref<128x128xf32, #tpu.memory_space<vmem>>, vector<128x128xf32>,
    return
  }
  func.func @transform_0(%arg0: i32) -> (i32, i32) {
    %c0_i32 = arith.constant 0 : i32
    %c0_i32_0 = arith.constant 0 : i32
    return %arg0, %c0_i32 : i32, i32
  }
  func.func @transform_1(%arg0: i32) -> (i32, i32) {
    %c0_i32 = arith.constant 0 : i32
    %c0_i32_0 = arith.constant 0 : i32
    %c0_i32_1 = arith.constant 0 : i32
    return %c0_i32, %c0_i32_0 : i32, i32
  }
  func.func @transform_2(%arg0: i32) -> (i32, i32) {
    %c0_i32 = arith.constant 0 : i32
    %c0_i32_0 = arith.constant 0 : i32
    %c0_i32_1 = arith.constant 0 : i32
    return %c0_i32, %c0_i32_0 : i32, i32
  }
  func.func @transform_3(%arg0: i32) -> (i32, i32) {
    %c0_i32 = arith.constant 0 : i32
    %c0_i32_0 = arith.constant 0 : i32
    %c0_i32_1 = arith.constant 0 : i32
    return %c0_i32, %c0_i32_0 : i32, i32
  }
  func.func @transform_4(%arg0: i32) -> (i32, i32) {
    %c0_i32 = arith.constant 0 : i32
    %c0_i32_0 = arith.constant 0 : i32
    %c0_i32_1 = arith.constant 0 : i32
    return %c0_i32, %c0_i32_0 : i32, i32
  }
  func.func @transform_5(%arg0: i32) -> (i32, i32) {
    %c0_i32 = arith.constant 0 : i32
    %c0_i32_0 = arith.constant 0 : i32
    %c0_i32_1 = arith.constant 0 : i32
    return %c0_i32, %c0_i32_0 : i32, i32
  }
  func.func @transform_6(%arg0: i32) -> (i32, i32) {
    %c0_i32 = arith.constant 0 : i32
    %c0_i32_0 = arith.constant 0 : i32
    %c0_i32_1 = arith.constant 0 : i32
    return %c0_i32, %c0_i32_0 : i32, i32
  }
  func.func @transform_7(%arg0: i32) -> (i32, i32) {
    %c0_i32 = arith.constant 0 : i32
    %c0_i32_0 = arith.constant 0 : i32
    return %arg0, %c0_i32 : i32, i32
  }
}

</mosaic_0001>

<bundles_post_ra>
// kernel: model_actor_forward.1
= control target key start
LH: loop header
LB: loop body
LE: loop exit
PB: predicated region body
PF: predicated region fallthrough
CT: control target
= control target key end

     0   :  { %s1464_s24 = smov 0   ;;  %s1743_s0 = inlined_call_operand.vmem [shape: f32[256,128], index: 0, kind: input, shape index: {}]   ;;  %s1744_s1 = inlined_call_operand.vmem [shape: f32[128,128], index: 1, kind: input, shape index: {}]   ;;  %s1745_s2 = inlined_call_operand.vmem [shape: f32[1,128], index: 2, kind: input, shape index: {}]   ;;  %s1746_s3 = inlined_call_operand.vmem [shape: f32[128,128], index: 3, kind: input, shape index: {}]   ;;  %s1747_s4 = inlined_call_operand.vmem [shape: f32[1,128], index: 4, kind: input, shape index: {}]   ;;  %s1748_s5 = inlined_call_operand.vmem [shape: f32[128,128], index: 5, kind: input, shape index: {}]   ;;  %s1749_s6 = inlined_call_operand.vmem [shape: f32[1,128], index: 6, kind: input, shape index: {}]   ;;  %s1750_s7 = inlined_call_operand.vmem [shape: f32[256,128], index: 7, kind: output, shape index: {}]  }
   0x1 LB: > { %s922_s25 = sadd.s32 4294967295, %s1422_s24   ;;  %p926_p0 = scmp.ge.s32.totalorder %s1422_s24, 1  ;;  %s1422_s24 = sphi %s1464_s24, %s17_s24  }
   0x2   : > { %p238_p1 = scmp.lt.s32.totalorder %s1422_s24, 3 }
   0x4   : > { %p239_p2 = pnand %p926_p0, %p238_p1 }
   0x5   : > { %v298_v0 = vld [vmem:[%s1744_s1] sm:$0xff] (!%p239_p2)  ;;  %v299_v1 = vld [vmem:[%s1744_s1 + $0x8] sm:$0xff] (!%p239_p2)  ;;  %v300_v2 = vld [vmem:[%s1744_s1 + $0x10] sm:$0xff] (!%p239_p2)  ;;  %s927_s9 = sshll.u32 (!%p239_p2), %s922_s25, 4 }
   0x6   : > { %242 = sbr.rel (%p239_p2) target bundleno = 749 (0x2ed), region = 48  ;;  %v1200_v3 = vpack.c.bf16 (!%p239_p2), %v299_v1, %v298_v0  ;;  %v301_v4 = vld [vmem:[%s1744_s1 + $0x18] sm:$0xff] (!%p239_p2)  ;;  %p271_p3 = scmp.lt.s32.totalorder (!%p239_p2), %s927_s9, 31  ;;  %v302_v6 = vld [vmem:[%s1744_s1 + $0x20] sm:$0xff] (!%p239_p2)  ;;  %v303_v7 = vld [vmem:[%s1744_s1 + $0x28] sm:$0xff] (!%p239_p2) }
   0x7   : > { %v1204_v5 = vpack.c.bf16 (!%p239_p2), %v301_v4, %v300_v2  ;;  %v1208_v8 = vpack.c.bf16 (!%p239_p2), %v303_v7, %v302_v6  ;;  %v304_v9 = vld [vmem:[%s1744_s1 + $0x30] sm:$0xff] (!%p239_p2)  ;;  %v482_v10 = vld [vmem:[%s1746_s3] sm:$0xff] (!%p239_p2)  ;;  %v483_v11 = vld [vmem:[%s1746_s3 + $0x8] sm:$0xff] (!%p239_p2) }
   0x8   : > { %1201 = vmatprep.subr.bf16.mxu0 (!%p239_p2), %v1200_v3  ;;  %v305_v12 = vld [vmem:[%s1744_s1 + $0x38] sm:$0xff] (!%p239_p2)  ;;  %v1232_v13 = vpack.c.bf16 (!%p239_p2), %v483_v11, %v482_v10  ;;  %v484_v14 = vld [vmem:[%s1746_s3 + $0x10] sm:$0xff] (!%p239_p2)  ;;  %v306_v19 = vld [vmem:[%s1744_s1 + $0x40] sm:$0xff] (!%p239_p2) }
   0x9   : > { %1203 = vmatpush3.bf16.msra.mxu0 (!%p239_p2), %v1200_v3  ;;  %v485_v15 = vld [vmem:[%s1746_s3 + $0x18] sm:$0xff] (!%p239_p2)  ;;  %v1212_v18 = vpack.c.bf16 (!%p239_p2), %v305_v12, %v304_v9  ;;  %v307_v20 = vld [vmem:[%s1744_s1 + $0x48] sm:$0xff] (!%p239_p2)  ;;  %v486_v21 = vld [vmem:[%s1746_s3 + $0x20] sm:$0xff] (!%p239_p2) }
   0xa   : > { %1205 = vmatprep.subr.bf16.mxu0 (!%p239_p2), %v1204_v5  ;;  %v1236_v17 = vpack.c.bf16 (!%p239_p2), %v485_v15, %v484_v14  ;;  %1233 = vmatprep.subr.bf16.mxu1 (!%p239_p2), %v1232_v13  ;;  %v487_v22 = vld [vmem:[%s1746_s3 + $0x28] sm:$0xff] (!%p239_p2)  ;;  %v488_v23 = vld [vmem:[%s1746_s3 + $0x30] sm:$0xff] (!%p239_p2)  ;;  %v1216_v24 = vpack.c.bf16 (!%p239_p2), %v307_v20, %v306_v19  ;;  %v489_v26 = vld [vmem:[%s1746_s3 + $0x38] sm:$0xff] (!%p239_p2) }
   0xb   : > { %1235 = vmatpush3.bf16.msra.mxu1 (!%p239_p2), %v1232_v13  ;;  %v1240_v25 = vpack.c.bf16 (!%p239_p2), %v487_v22, %v486_v21  ;;  %v308_v27 = vld [vmem:[%s1744_s1 + $0x50] sm:$0xff] (!%p239_p2)  ;;  %v309_v28 = vld [vmem:[%s1744_s1 + $0x58] sm:$0xff] (!%p239_p2)  ;;  %v1244_v29 = vpack.c.bf16 (!%p239_p2), %v489_v26, %v488_v23  ;;  %v310_v31 = vld [vmem:[%s1744_s1 + $0x60] sm:$0xff] (!%p239_p2) }
   0xc   : > { %1237 = vmatprep.subr.bf16.mxu1 (!%p239_p2), %v1236_v17  ;;  %v1220_v30 = vpack.c.bf16 (!%p239_p2), %v309_v28, %v308_v27  ;;  %v311_v32 = vld [vmem:[%s1744_s1 + $0x68] sm:$0xff] (!%p239_p2)  ;;  %v312_v34 = vld [vmem:[%s1744_s1 + $0x70] sm:$0xff] (!%p239_p2)  ;;  %v313_v35 = vld [vmem:[%s1744_s1 + $0x78] sm:$0xff] (!%p239_p2) }
   0xd   : > { %s1752_s9 = smov (!%p271_p3, %s927_s9), 31  ;;  %1207 = vmatpush3.bf16.msra.mxu0 %v1204_v5  ;;  %v1224_v33 = vpack.c.bf16 %v311_v32, %v310_v31  ;;  %v1228_v36 = vpack.c.bf16 %v313_v35, %v312_v34  ;;  %v490_v52 = vld [vmem:[%s1746_s3 + $0x40] sm:$0xff]  ;;  %v491_v53 = vld [vmem:[%s1746_s3 + $0x48] sm:$0xff]  ;;  %v492_v55 = vld [vmem:[%s1746_s3 + $0x50] sm:$0xff] }
   0xe   : > { %s928_s18 = sshll.u32 %s1752_s9, 3  ;;  %1209 = vmatprep.subr.bf16.mxu0 %v1208_v8  ;;  %v1248_v54 = vpack.c.bf16 %v491_v53, %v490_v52  ;;  %v493_v56 = vld [vmem:[%s1746_s3 + $0x58] sm:$0xff]  ;;  %v494_v58 = vld [vmem:[%s1746_s3 + $0x60] sm:$0xff]  ;;  %v495_v59 = vld [vmem:[%s1746_s3 + $0x68] sm:$0xff] }
   0xf   : > { %s1510_s28 = scalar_lea.vmem %s1743_s0, %s928_s18  ;;  %1239 = vmatpush3.bf16.msra.mxu1 %v1236_v17  ;;  %v1252_v57 = vpack.c.bf16 %v493_v56, %v492_v55  ;;  %v1256_v60 = vpack.c.bf16 %v495_v59, %v494_v58  ;;  %v496_v61 = vld [vmem:[%s1746_s3 + $0x70] sm:$0xff]  ;;  %v497_v62 = vld [vmem:[%s1746_s3 + $0x78] sm:$0xff]  ;;  %v666_v0 = vld [vmem:[%s1748_s5] sm:$0xff]  ;;  %s1712_s12 = scalar_lea.vmem %s1750_s7, %s928_s18 }
  0x10   : > { %v282_v16 = vld [vmem:[%s1510_s28] sm:$0xff]  ;;  %1241 = vmatprep.subr.bf16.mxu1 %v1240_v25  ;;  %v283_v37 = vld [vmem:[%s1510_s28 + $0x8] sm:$0xff]  ;;  %v284_v38 = vld [vmem:[%s1510_s28 + $0x10] sm:$0xff]  ;;  %v1260_v63 = vpack.c.bf16 %v497_v62, %v496_v61 }
  0x11   : > { %1064 = vmatprep.mubr.f32.mxu0 %v282_v16  ;;  %1211 = vmatpush3.bf16.msra.mxu0 %v1208_v8  ;;  %v285_v39 = vld [vmem:[%s1510_s28 + $0x18] sm:$0xff]  ;;  %v286_v40 = vld [vmem:[%s1510_s28 + $0x20] sm:$0xff]  ;;  %v287_v41 = vld [vmem:[%s1510_s28 + $0x28] sm:$0xff] }
  0x12   : > { %1213 = vmatprep.subr.bf16.mxu0 %v1212_v18  ;;  %v288_v42 = vld [vmem:[%s1510_s28 + $0x30] sm:$0xff]  ;;  %v289_v43 = vld [vmem:[%s1510_s28 + $0x38] sm:$0xff]  ;;  %v290_v44 = vld [vmem:[%s1510_s28 + $0x40] sm:$0xff] }
  0x13   : > { %1243 = vmatpush3.bf16.msra.mxu1 %v1240_v25  ;;  %v291_v45 = vld [vmem:[%s1510_s28 + $0x48] sm:$0xff]  ;;  %v292_v46 = vld [vmem:[%s1510_s28 + $0x50] sm:$0xff]  ;;  %v293_v47 = vld [vmem:[%s1510_s28 + $0x58] sm:$0xff] }
  0x14   : > { %1245 = vmatprep.subr.bf16.mxu1 %v1244_v29  ;;  %v294_v48 = vld [vmem:[%s1510_s28 + $0x60] sm:$0xff]  ;;  %v295_v49 = vld [vmem:[%s1510_s28 + $0x68] sm:$0xff]  ;;  %v296_v50 = vld [vmem:[%s1510_s28 + $0x70] sm:$0xff] }
  0x15   : > { %1215 = vmatpush3.bf16.msra.mxu0 %v1212_v18  ;;  %v297_v51 = vld [vmem:[%s1510_s28 + $0x78] sm:$0xff]  ;;  %v667_v1 = vld [vmem:[%s1748_s5 + $0x8] sm:$0xff]  ;;  %v668_v2 = vld [vmem:[%s1748_s5 + $0x10] sm:$0xff] }
  0x16   : > { %1217 = vmatprep.subr.bf16.mxu0 %v1216_v24  ;;  %v1264_v3 = vpack.c.bf16 %v667_v1, %v666_v0  ;;  %v669_v4 = vld [vmem:[%s1748_s5 + $0x18] sm:$0xff]  ;;  %v670_v6 = vld [vmem:[%s1748_s5 + $0x20] sm:$0xff]  ;;  %v671_v7 = vld [vmem:[%s1748_s5 + $0x28] sm:$0xff] }
  0x17   : > { %1247 = vmatpush3.bf16.msra.mxu1 %v1244_v29  ;;  %v1268_v5 = vpack.c.bf16 %v669_v4, %v668_v2  ;;  %v1612_v8 = vpack.c.bf16 %v671_v7, %v670_v6  ;;  %v672_v9 = vld [vmem:[%s1748_s5 + $0x30] sm:$0xff]  ;;  %v673_v10 = vld [vmem:[%s1748_s5 + $0x38] sm:$0xff]  ;;  %v1629_v12 = vld [vmem:[%s1745_s2] ss:$0 sm:$0xff] }
  0x18   : > { %1249 = vmatprep.subr.bf16.mxu1 %v1248_v54  ;;  %v1621_v11 = vpack.c.bf16 %v673_v10, %v672_v9  ;;  %v674_v61 = vld [vmem:[%s1748_s5 + $0x40] sm:$0xff]  ;;  %v675_v62 = vld [vmem:[%s1748_s5 + $0x48] sm:$0xff]  ;;  %v676_v0 = vld [vmem:[%s1748_s5 + $0x50] sm:$0xff] }
  0x19   : > { %1219 = vmatpush3.bf16.msra.mxu0 %v1216_v24  ;;  %v677_v1 = vld [vmem:[%s1748_s5 + $0x58] sm:$0xff]  ;;  %v679_v4 = vld [vmem:[%s1748_s5 + $0x68] sm:$0xff]  ;;  %v680_v6 = vld [vmem:[%s1748_s5 + $0x70] sm:$0xff] }
  0x1a   : > { %1221 = vmatprep.subr.bf16.mxu0 %v1220_v30  ;;  %v1284_v2 = vpack.c.bf16 %v677_v1, %v676_v0  ;;  %v681_v7 = vld [vmem:[%s1748_s5 + $0x78] sm:$0xff]  ;;  %v1678_v9 = vld [vmem:[%s1747_s4] ss:$0 sm:$0xff] }
  0x1b   : > { %1251 = vmatpush3.bf16.msra.mxu1 %v1248_v54 }
  0x1c   : > { %1253 = vmatprep.subr.bf16.mxu1 %v1252_v57 }
  0x1d   : > { %1223 = vmatpush3.bf16.msra.mxu0 %v1220_v30 }
  0x1e   : > { %1225 = vmatprep.subr.bf16.mxu0 %v1224_v33 }
  0x1f   : > { %1255 = vmatpush3.bf16.msra.mxu1 %v1252_v57 }
  0x20   : > { %1257 = vmatprep.subr.bf16.mxu1 %v1256_v60 }
  0x21   : > { %1227 = vmatpush3.bf16.msra.mxu0 %v1224_v33 }
  0x22   : > { %1229 = vmatprep.subr.bf16.mxu0 %v1228_v36 }
  0x23   : > { %1259 = vmatpush3.bf16.msra.mxu1 %v1256_v60 }
  0x24   : > { %1261 = vmatprep.subr.bf16.mxu1 %v1260_v63 }
  0x25   : > { %1231 = vmatpush3.bf16.msra.mxu0 %v1228_v36 }
  0x26   : > { %1265 = vmatprep.subr.bf16.mxu0 %v1264_v3 }
  0x27   : > { %1263 = vmatpush3.bf16.msra.mxu1 %v1260_v63  ;;  %v1280_v63 = vpack.c.bf16 %v675_v62, %v674_v61 }
  0x28   : > { %1065 = vmatmul.mubr.f32.vlgmr.msra.gmra.mrb[0].mxu0 %v283_v37  ;;  %1296 = vmatprep.subr.bf16.mxu1 %v1264_v3 }
  0x29   : > { %1067 = vmatprep.mubr.f32.mxu0 %v284_v38  ;;  %1267 = vmatpush3.bf16.msra.mxu0 %v1264_v3 }
  0x2a   : > { %1269 = vmatprep.subr.bf16.mxu0 %v1268_v5 }
  0x2c   : > { %1068 = vmatmul.mubr.f32.gmra.mrb[2].mxu0 %v285_v39 }
  0x2d   : > { %1070 = vmatprep.mubr.f32.mxu0 %v286_v40  ;;  %1271 = vmatpush3.bf16.msra.mxu0 %v1268_v5 }
  0x2e   : > { %1273 = vmatprep.subr.bf16.mxu0 %v1612_v8 }
  0x30   : > { %1071 = vmatmul.mubr.f32.gmra.mrb[4].mxu0 %v287_v41 }
  0x31   : > { %1073 = vmatprep.mubr.f32.mxu0 %v288_v42  ;;  %1275 = vmatpush3.bf16.msra.mxu0 %v1612_v8 }
  0x32   : > { %1277 = vmatprep.subr.bf16.mxu0 %v1621_v11 }
  0x34   : > { %1074 = vmatmul.mubr.f32.gmra.mrb[6].mxu0 %v289_v43 }
  0x35   : > { %1076 = vmatprep.mubr.f32.mxu0 %v290_v44  ;;  %1279 = vmatpush3.bf16.msra.mxu0 %v1621_v11 }
  0x36   : > { %1281 = vmatprep.subr.bf16.mxu0 %v1280_v63 }
  0x38   : > { %1077 = vmatmul.mubr.f32.gmra.mrb[8].mxu0 %v291_v45 }
  0x39   : > { %1079 = vmatprep.mubr.f32.mxu0 %v292_v46  ;;  %1283 = vmatpush3.bf16.msra.mxu0 %v1280_v63 }
  0x3a   : > { %1285 = vmatprep.subr.bf16.mxu0 %v1284_v2 }
  0x3c   : > { %1080 = vmatmul.mubr.f32.gmra.mrb[10].mxu0 %v293_v47 }
  0x3d   : > { %1082 = vmatprep.mubr.f32.mxu0 %v294_v48  ;;  %1287 = vmatpush3.bf16.msra.mxu0 %v1284_v2 }
  0x40   : > { %1083 = vmatmul.mubr.f32.gmra.mrb[12].mxu0 %v295_v49 }
  0x41   : > { %1085 = vmatprep.mubr.f32.mxu0 %v296_v50 }
  0x44   : > { %1086 = vmatmul.mubr.f32.gmra.mrb[14].mxu0 %v297_v51 }
  0xfb   : > { %v1066_v13 = vpop.f32.mrb[0].mxu0 }
  0xfc   : > { %v393_v14 = vadd.f32 %v1066_v13, %v1629_v12  ;;  %v387_v15 = vpop.f32.mrb[1].mxu0 }
  0xfd   : > { %v388_v16 = vadd.f32 %v1629_v12, %v387_v15 }
  0xff   : > { %1320 = vtanh.f32 %v388_v16  ;;  %v1069_v17 = vpop.f32.mrb[2].mxu0 }
 0x100   : > { %1322 = vtanh.f32 %v393_v14  ;;  %v403_v18 = vadd.f32 %v1069_v17, %v1629_v12  ;;  %v397_v19 = vpop.f32.mrb[3].mxu0 }
 0x101   : > { %v398_v20 = vadd.f32 %v1629_v12, %v397_v19 }
 0x103   : > { %1324 = vtanh.f32 %v398_v20  ;;  %v1072_v21 = vpop.f32.mrb[4].mxu0 }
 0x104   : > { %1326 = vtanh.f32 %v403_v18  ;;  %v413_v22 = vadd.f32 %v1072_v21, %v1629_v12  ;;  %v407_v23 = vpop.f32.mrb[5].mxu0 }
 0x105   : > { %v408_v24 = vadd.f32 %v1629_v12, %v407_v23 }
 0x107   : > { %1328 = vtanh.f32 %v408_v24  ;;  %v1075_v25 = vpop.f32.mrb[6].mxu0 }
 0x108   : > { %1330 = vtanh.f32 %v413_v22  ;;  %v423_v26 = vadd.f32 %v1075_v25, %v1629_v12  ;;  %v417_v27 = vpop.f32.mrb[7].mxu0 }
 0x109   : > { %v1321_v28 = vpop.eup %1320  ;;  %v418_v29 = vadd.f32 %v1629_v12, %v417_v27 }
 0x10a   : > { %v1323_v30 = vpop.eup %1322  ;;  %1120 = vmatprep.mubr.f32.mxu1 %v1321_v28 }
 0x10b   : > { %1332 = vtanh.f32 %v418_v29  ;;  %v1078_v31 = vpop.f32.mrb[8].mxu0  ;;  %1121 = vmatmul.mubr.f32.vlgmr.msra.gmra.mrb[0].mxu1 %v1323_v30 }
 0x10c   : > { %1334 = vtanh.f32 %v423_v26  ;;  %v433_v32 = vadd.f32 %v1078_v31, %v1629_v12  ;;  %v427_v33 = vpop.f32.mrb[9].mxu0  ;;  %1304 = vmatpush3.bf16.msra.mxu1 %v1264_v3  ;;  %v678_v3 = vld [vmem:[%s1748_s5 + $0x60] sm:$0xff] }
 0x10d   : > { %v1325_v34 = vpop.eup %1324  ;;  %v428_v35 = vadd.f32 %v1629_v12, %v427_v33  ;;  %1297 = vmatprep.subr.bf16.mxu1 %v1268_v5 }
 0x10e   : > { %v1327_v36 = vpop.eup %1326  ;;  %1123 = vmatprep.mubr.f32.mxu1 %v1325_v34 }
 0x10f   : > { %1336 = vtanh.f32 %v428_v35  ;;  %v1081_v37 = vpop.f32.mrb[10].mxu0  ;;  %1124 = vmatmul.mubr.f32.gmra.mrb[2].mxu1 %v1327_v36 }
 0x110   : > { %1338 = vtanh.f32 %v433_v32  ;;  %v443_v38 = vadd.f32 %v1081_v37, %v1629_v12  ;;  %v437_v39 = vpop.f32.mrb[11].mxu0  ;;  %1305 = vmatpush3.bf16.msra.mxu1 %v1268_v5  ;;  %v1288_v5 = vpack.c.bf16 %v679_v4, %v678_v3 }
 0x111   : > { %v1329_v40 = vpop.eup %1328  ;;  %v438_v41 = vadd.f32 %v1629_v12, %v437_v39  ;;  %1298 = vmatprep.subr.bf16.mxu1 %v1612_v8 }
 0x112   : > { %v1331_v42 = vpop.eup %1330  ;;  %1126 = vmatprep.mubr.f32.mxu1 %v1329_v40  ;;  %1289 = vmatprep.subr.bf16.mxu0 %v1288_v5 }
 0x113   : > { %1340 = vtanh.f32 %v438_v41  ;;  %v1084_v43 = vpop.f32.mrb[12].mxu0  ;;  %1127 = vmatmul.mubr.f32.gmra.mrb[4].mxu1 %v1331_v42  ;;  %1291 = vmatpush3.bf16.msra.mxu0 %v1288_v5 }
 0x114   : > { %1342 = vtanh.f32 %v443_v38  ;;  %v453_v44 = vadd.f32 %v1084_v43, %v1629_v12  ;;  %v447_v45 = vpop.f32.mrb[13].mxu0  ;;  %1306 = vmatpush3.bf16.msra.mxu1 %v1612_v8  ;;  %v1292_v8 = vpack.c.bf16 %v681_v7, %v680_v6 }
 0x115   : > { %v1333_v46 = vpop.eup %1332  ;;  %v448_v47 = vadd.f32 %v1629_v12, %v447_v45  ;;  %1299 = vmatprep.subr.bf16.mxu1 %v1621_v11 }
 0x116   : > { %v1335_v48 = vpop.eup %1334  ;;  %1129 = vmatprep.mubr.f32.mxu1 %v1333_v46  ;;  %1293 = vmatprep.subr.bf16.mxu0 %v1292_v8 }
 0x117   : > { %1344 = vtanh.f32 %v448_v47  ;;  %v1087_v49 = vpop.f32.mrb[14].mxu0  ;;  %1130 = vmatmul.mubr.f32.gmra.mrb[6].mxu1 %v1335_v48  ;;  %1295 = vmatpush3.bf16.msra.mxu0 %v1292_v8 }
 0x118   : > { %1346 = vtanh.f32 %v453_v44  ;;  %v463_v50 = vadd.f32 %v1087_v49, %v1629_v12  ;;  %v457_v51 = vpop.f32.mrb[15].mxu0  ;;  %1307 = vmatpush3.bf16.msra.mxu1 %v1621_v11 }
 0x119   : > { %v1337_v52 = vpop.eup %1336  ;;  %v458_v53 = vadd.f32 %v1629_v12, %v457_v51  ;;  %1300 = vmatprep.subr.bf16.mxu1 %v1280_v63 }
 0x11a   : > { %v1339_v54 = vpop.eup %1338  ;;  %1132 = vmatprep.mubr.f32.mxu1 %v1337_v52 }
 0x11b   : > { %1348 = vtanh.f32 %v458_v53  ;;  %1133 = vmatmul.mubr.f32.gmra.mrb[8].mxu1 %v1339_v54 }
 0x11c   : > { %1350 = vtanh.f32 %v463_v50  ;;  %1308 = vmatpush3.bf16.msra.mxu1 %v1280_v63 }
 0x11d   : > { %v1341_v55 = vpop.eup %1340  ;;  %1301 = vmatprep.subr.bf16.mxu1 %v1284_v2 }
 0x11e   : > { %v1343_v56 = vpop.eup %1342  ;;  %1135 = vmatprep.mubr.f32.mxu1 %v1341_v55 }
 0x11f   : > { %1136 = vmatmul.mubr.f32.gmra.mrb[10].mxu1 %v1343_v56 }
 0x120   : > { %1309 = vmatpush3.bf16.msra.mxu1 %v1284_v2 }
 0x121   : > { %v1345_v57 = vpop.eup %1344  ;;  %1302 = vmatprep.subr.bf16.mxu1 %v1288_v5 }
 0x122   : > { %v1347_v58 = vpop.eup %1346  ;;  %1138 = vmatprep.mubr.f32.mxu1 %v1345_v57 }
 0x123   : > { %1139 = vmatmul.mubr.f32.gmra.mrb[12].mxu1 %v1347_v58  ;;  %v1699_v58 = vld [vmem:[%s1749_s6] ss:$0 sm:$0xff] }
 0x124   : > { %1310 = vmatpush3.bf16.msra.mxu1 %v1288_v5 }
 0x125   : > { %v1349_v59 = vpop.eup %1348  ;;  %1303 = vmatprep.subr.bf16.mxu1 %v1292_v8 }
 0x126   : > { %v1351_v60 = vpop.eup %1350  ;;  %1141 = vmatprep.mubr.f32.mxu1 %v1349_v59 }
 0x127   : > { %1142 = vmatmul.mubr.f32.gmra.mrb[14].mxu1 %v1351_v60 }
 0x128   : > { %1311 = vmatpush3.bf16.msra.mxu1 %v1292_v8 }
 0x1de   : > { %v1122_v10 = vpop.f32.mrb[0].mxu1 }
 0x1df   : > { %v577_v11 = vadd.f32 %v1122_v10, %v1678_v9  ;;  %v571_v12 = vpop.f32.mrb[1].mxu1 }
 0x1e0   : > { %v572_v13 = vadd.f32 %v1678_v9, %v571_v12 }
 0x1e2   : > { %1352 = vtanh.f32 %v572_v13  ;;  %v1125_v14 = vpop.f32.mrb[2].mxu1 }
 0x1e3   : > { %1354 = vtanh.f32 %v577_v11  ;;  %v587_v15 = vadd.f32 %v1125_v14, %v1678_v9  ;;  %v581_v16 = vpop.f32.mrb[3].mxu1 }
 0x1e4   : > { %v582_v17 = vadd.f32 %v1678_v9, %v581_v16 }
 0x1e6   : > { %1356 = vtanh.f32 %v582_v17  ;;  %v1128_v18 = vpop.f32.mrb[4].mxu1 }
 0x1e7   : > { %1358 = vtanh.f32 %v587_v15  ;;  %v597_v19 = vadd.f32 %v1128_v18, %v1678_v9  ;;  %v591_v20 = vpop.f32.mrb[5].mxu1 }
 0x1e8   : > { %v592_v21 = vadd.f32 %v1678_v9, %v591_v20 }
 0x1ea   : > { %1360 = vtanh.f32 %v592_v21  ;;  %v1131_v22 = vpop.f32.mrb[6].mxu1 }
 0x1eb   : > { %1362 = vtanh.f32 %v597_v19  ;;  %v607_v23 = vadd.f32 %v1131_v22, %v1678_v9  ;;  %v601_v24 = vpop.f32.mrb[7].mxu1 }
 0x1ec   : > { %v1353_v25 = vpop.eup %1352  ;;  %v602_v26 = vadd.f32 %v1678_v9, %v601_v24 }
 0x1ed   : > { %v1355_v27 = vpop.eup %1354  ;;  %1176 = vmatprep.mubr.f32.mxu0 %v1353_v25 }
 0x1ee   : > { %1364 = vtanh.f32 %v602_v26  ;;  %v1134_v28 = vpop.f32.mrb[8].mxu1  ;;  %1177 = vmatmul.mubr.f32.vlgmr.msra.gmra.mrb[16].mxu0 %v1355_v27 }
 0x1ef   : > { %1366 = vtanh.f32 %v607_v23  ;;  %v617_v29 = vadd.f32 %v1134_v28, %v1678_v9  ;;  %v611_v30 = vpop.f32.mrb[9].mxu1 }
 0x1f0   : > { %v1357_v31 = vpop.eup %1356  ;;  %v612_v32 = vadd.f32 %v1678_v9, %v611_v30 }
 0x1f1   : > { %v1359_v33 = vpop.eup %1358  ;;  %1179 = vmatprep.mubr.f32.mxu0 %v1357_v31 }
 0x1f2   : > { %1368 = vtanh.f32 %v612_v32  ;;  %v1137_v34 = vpop.f32.mrb[10].mxu1  ;;  %1180 = vmatmul.mubr.f32.gmra.mrb[18].mxu0 %v1359_v33 }
 0x1f3   : > { %1370 = vtanh.f32 %v617_v29  ;;  %v627_v35 = vadd.f32 %v1137_v34, %v1678_v9  ;;  %v621_v36 = vpop.f32.mrb[11].mxu1 }
 0x1f4   : > { %v1361_v37 = vpop.eup %1360  ;;  %v622_v38 = vadd.f32 %v1678_v9, %v621_v36 }
 0x1f5   : > { %v1363_v39 = vpop.eup %1362  ;;  %1182 = vmatprep.mubr.f32.mxu0 %v1361_v37 }
 0x1f6   : > { %1372 = vtanh.f32 %v622_v38  ;;  %v1140_v40 = vpop.f32.mrb[12].mxu1  ;;  %1183 = vmatmul.mubr.f32.gmra.mrb[20].mxu0 %v1363_v39 }
 0x1f7   : > { %1374 = vtanh.f32 %v627_v35  ;;  %v637_v41 = vadd.f32 %v1140_v40, %v1678_v9  ;;  %v631_v42 = vpop.f32.mrb[13].mxu1 }
 0x1f8   : > { %v1365_v43 = vpop.eup %1364  ;;  %v632_v44 = vadd.f32 %v1678_v9, %v631_v42 }
 0x1f9   : > { %v1367_v45 = vpop.eup %1366  ;;  %1185 = vmatprep.mubr.f32.mxu0 %v1365_v43 }
 0x1fa   : > { %1376 = vtanh.f32 %v632_v44  ;;  %v1143_v46 = vpop.f32.mrb[14].mxu1  ;;  %1186 = vmatmul.mubr.f32.gmra.mrb[22].mxu0 %v1367_v45 }
 0x1fb   : > { %1378 = vtanh.f32 %v637_v41  ;;  %v647_v47 = vadd.f32 %v1143_v46, %v1678_v9  ;;  %v641_v48 = vpop.f32.mrb[15].mxu1 }
 0x1fc   : > { %v1369_v49 = vpop.eup %1368  ;;  %v642_v50 = vadd.f32 %v1678_v9, %v641_v48 }
 0x1fd   : > { %v1371_v51 = vpop.eup %1370  ;;  %1188 = vmatprep.mubr.f32.mxu1 %v1369_v49 }
 0x1fe   : > { %1380 = vtanh.f32 %v642_v50  ;;  %1189 = vmatmul.mubr.f32.vlgmr.msra.gmra.mrb[16].mxu1 %v1371_v51 }
 0x1ff   : > { %1382 = vtanh.f32 %v647_v47 }
 0x200   : > { %v1373_v52 = vpop.eup %1372 }
 0x201   : > { %v1375_v53 = vpop.eup %1374  ;;  %1191 = vmatprep.mubr.f32.mxu1 %v1373_v52 }
 0x202   : > { %1192 = vmatmul.mubr.f32.gmra.mrb[18].mxu1 %v1375_v53 }
 0x204   : > { %v1377_v54 = vpop.eup %1376 }
 0x205   : > { %v1379_v55 = vpop.eup %1378  ;;  %1194 = vmatprep.mubr.f32.mxu1 %v1377_v54 }
 0x206   : > { %1195 = vmatmul.mubr.f32.gmra.mrb[20].mxu1 %v1379_v55 }
 0x208   : > { %v1381_v56 = vpop.eup %1380 }
 0x209   : > { %v1383_v57 = vpop.eup %1382  ;;  %1197 = vmatprep.mubr.f32.mxu1 %v1381_v56 }
 0x20a   : > { %1198 = vmatmul.mubr.f32.gmra.mrb[22].mxu1 %v1383_v57 }
 0x2c1   : > { %v1178_v59 = vpop.f32.mrb[16].mxu0 }
 0x2c2   : > { %v761_v60 = vadd.f32 %v1178_v59, %v1699_v58  ;;  %v755_v61 = vpop.f32.mrb[17].mxu0 }
 0x2c3   : > { %v756_v62 = vadd.f32 %v1699_v58, %v755_v61 }
 0x2c4   : > { %1384 = vtanh.f32 %v761_v60 }
 0x2c5   : > { %1386 = vtanh.f32 %v756_v62  ;;  %v1181_v63 = vpop.f32.mrb[18].mxu0 }
 0x2c6   : > { %v771_v0 = vadd.f32 %v1181_v63, %v1699_v58  ;;  %v765_v1 = vpop.f32.mrb[19].mxu0 }
 0x2c7   : > { %v766_v2 = vadd.f32 %v1699_v58, %v765_v1 }
 0x2c8   : > { %1388 = vtanh.f32 %v771_v0 }
 0x2c9   : > { %1390 = vtanh.f32 %v766_v2  ;;  %v1184_v3 = vpop.f32.mrb[20].mxu0 }
 0x2ca   : > { %v781_v4 = vadd.f32 %v1184_v3, %v1699_v58  ;;  %v775_v5 = vpop.f32.mrb[21].mxu0 }
 0x2cb   : > { %v776_v6 = vadd.f32 %v1699_v58, %v775_v5 }
 0x2cc   : > { %1392 = vtanh.f32 %v781_v4 }
 0x2cd   : > { %1394 = vtanh.f32 %v776_v6  ;;  %v1187_v7 = vpop.f32.mrb[22].mxu0 }
 0x2ce   : > { %v1385_v8 = vpop.eup %1384  ;;  %v791_v9 = vadd.f32 %v1187_v7, %v1699_v58  ;;  %v785_v10 = vpop.f32.mrb[23].mxu0 }
 0x2cf   : > { %v1387_v11 = vpop.eup %1386  ;;  %851 = vst [vmem:[%s1712_s12 + $0x8] sm:$0xff] %v1385_v8  ;;  %v786_v12 = vadd.f32 %v1699_v58, %v785_v10 }
 0x2d0   : > { %850 = vst [vmem:[%s1712_s12] sm:$0xff] %v1387_v11  ;;  %1396 = vtanh.f32 %v791_v9 }
 0x2d1   : > { %1398 = vtanh.f32 %v786_v12  ;;  %v1190_v13 = vpop.f32.mrb[16].mxu1 }
 0x2d2   : > { %v1389_v14 = vpop.eup %1388  ;;  %v801_v15 = vadd.f32 %v1190_v13, %v1699_v58  ;;  %v795_v16 = vpop.f32.mrb[17].mxu1 }
 0x2d3   : > { %v1391_v17 = vpop.eup %1390  ;;  %853 = vst [vmem:[%s1712_s12 + $0x18] sm:$0xff] %v1389_v14  ;;  %v796_v18 = vadd.f32 %v1699_v58, %v795_v16 }
 0x2d4   : > { %852 = vst [vmem:[%s1712_s12 + $0x10] sm:$0xff] %v1391_v17  ;;  %1400 = vtanh.f32 %v801_v15 }
 0x2d5   : > { %1402 = vtanh.f32 %v796_v18  ;;  %v1193_v19 = vpop.f32.mrb[18].mxu1 }
 0x2d6   : > { %v1393_v20 = vpop.eup %1392  ;;  %v811_v21 = vadd.f32 %v1193_v19, %v1699_v58  ;;  %v805_v22 = vpop.f32.mrb[19].mxu1 }
 0x2d7   : > { %v1395_v23 = vpop.eup %1394  ;;  %855 = vst [vmem:[%s1712_s12 + $0x28] sm:$0xff] %v1393_v20  ;;  %v806_v24 = vadd.f32 %v1699_v58, %v805_v22 }
 0x2d8   : > { %854 = vst [vmem:[%s1712_s12 + $0x20] sm:$0xff] %v1395_v23  ;;  %1404 = vtanh.f32 %v811_v21 }
 0x2d9   : > { %1406 = vtanh.f32 %v806_v24  ;;  %v1196_v25 = vpop.f32.mrb[20].mxu1 }
 0x2da   : > { %v1397_v26 = vpop.eup %1396  ;;  %v821_v27 = vadd.f32 %v1196_v25, %v1699_v58  ;;  %v815_v28 = vpop.f32.mrb[21].mxu1 }
 0x2db   : > { %v1399_v29 = vpop.eup %1398  ;;  %857 = vst [vmem:[%s1712_s12 + $0x38] sm:$0xff] %v1397_v26  ;;  %v816_v30 = vadd.f32 %v1699_v58, %v815_v28 }
 0x2dc   : > { %856 = vst [vmem:[%s1712_s12 + $0x30] sm:$0xff] %v1399_v29  ;;  %1408 = vtanh.f32 %v821_v27 }
 0x2dd   : > { %1410 = vtanh.f32 %v816_v30  ;;  %v1199_v31 = vpop.f32.mrb[22].mxu1 }
 0x2de   : > { %v1401_v32 = vpop.eup %1400  ;;  %v831_v33 = vadd.f32 %v1199_v31, %v1699_v58  ;;  %v825_v34 = vpop.f32.mrb[23].mxu1 }
 0x2df   : > { %v1403_v35 = vpop.eup %1402  ;;  %859 = vst [vmem:[%s1712_s12 + $0x48] sm:$0xff] %v1401_v32  ;;  %v826_v36 = vadd.f32 %v1699_v58, %v825_v34 }
 0x2e0   : > { %858 = vst [vmem:[%s1712_s12 + $0x40] sm:$0xff] %v1403_v35  ;;  %1412 = vtanh.f32 %v831_v33 }
 0x2e1   : > { %1414 = vtanh.f32 %v826_v36 }
 0x2e2   : > { %v1405_v37 = vpop.eup %1404 }
 0x2e3   : > { %v1407_v38 = vpop.eup %1406  ;;  %861 = vst [vmem:[%s1712_s12 + $0x58] sm:$0xff] %v1405_v37 }
 0x2e4   : > { %860 = vst [vmem:[%s1712_s12 + $0x50] sm:$0xff] %v1407_v38 }
 0x2e6   : > { %v1409_v39 = vpop.eup %1408 }
 0x2e7   : > { %v1411_v40 = vpop.eup %1410  ;;  %863 = vst [vmem:[%s1712_s12 + $0x68] sm:$0xff] %v1409_v39 }
 0x2e8   : > { %862 = vst [vmem:[%s1712_s12 + $0x60] sm:$0xff] %v1411_v40 }
 0x2ea   : > { %v1413_v41 = vpop.eup %1412 }
 0x2eb   : > { %v1415_v42 = vpop.eup %1414  ;;  %865 = vst [vmem:[%s1712_s12 + $0x78] sm:$0xff] %v1413_v41 }
 0x2ec   : > { %864 = vst [vmem:[%s1712_s12 + $0x70] sm:$0xff] %v1415_v42 }
 0x2ed PF: > { %s17_s24 = sadd.s32 1, %s1422_s24  }
 0x2ee   : > { %p14_p4 = scmp.ge.s32.totalorder %s17_s24, 4  }
 0x2f0   :  { %16 = sbr.rel (!%p14_p4) target bundleno = 1 (0x1), region = 78 }

</bundles_post_ra>
